<compile_context>
chip_gen: v6e
topology: v6e:2x2x1
jax: 0.10.0
libtpu: 0.0.40
codegen_flags: <defaults>
</compile_context>

<pallas_src>
import jax
import jax.numpy as jnp
from jax.experimental import pallas as pl
from jax.experimental.pallas import tpu as pltpu


LANE = 128       # output / feature dims padded to a multiple of this (lane-dense stores)
SUBLANE = 8
ROW_TILE = 512   # max rows per grid step (dst-row tile and src/K tile)


def _round_up(x, m):
    return ((x + m - 1) // m) * m


def _pad_count(n):
    """Padded node count: multiple of 8 for small graphs, of ROW_TILE for big ones."""
    return _round_up(n, SUBLANE) if n <= ROW_TILE else _round_up(n, ROW_TILE)


def _tile_of(n_pad):
    return n_pad if n_pad <= ROW_TILE else ROW_TILE


# ----------------------------------------------------------------------------
# Pallas kernels
# ----------------------------------------------------------------------------
def _root_linear_kernel(x_ref, w_ref, b_ref, o_ref):
    # o = x @ w + b   (bf16 inputs, f32 MXU accumulation, lane-dense f32 output)
    o_ref[...] = (
        jnp.dot(x_ref[...], w_ref[...], preferred_element_type=jnp.float32)
        + b_ref[...]
    ).astype(o_ref.dtype)


def _rel_agg_linear_kernel(adj_ref, x_ref, rdeg_ref, w_ref, acc_ref, o_ref, agg_sc):
    # Fused:  o = acc + ((adj @ x) * rdeg) @ w
    # grid = (dst-row blocks, src/K blocks); K axis is the reduction ('arbitrary').
    k = pl.program_id(1)

    @pl.when(k == 0)
    def _():
        agg_sc[...] = jnp.zeros_like(agg_sc)

    agg_sc[...] += jnp.dot(
        adj_ref[...], x_ref[...], preferred_element_type=jnp.float32
    )

    @pl.when(k == pl.num_programs(1) - 1)
    def _():
        mean = (agg_sc[...] * rdeg_ref[...]).astype(w_ref.dtype)
        o_ref[...] = (
            acc_ref[...]
            + jnp.dot(mean, w_ref[...], preferred_element_type=jnp.float32)
        ).astype(o_ref.dtype)


# ----------------------------------------------------------------------------
# Pallas wrappers
# ----------------------------------------------------------------------------
def _pad_weight_t(weight, in_pad, out_pad):
    """PyTorch-style [out_c, in_c] f32 weight -> zero-padded bf16 [in_pad, out_pad] W^T."""
    out_c, in_c = weight.shape
    wt = jnp.zeros((in_pad, out_pad), jnp.bfloat16)
    return wt.at[:in_c, :out_c].set(weight.T.astype(jnp.bfloat16))


def pallas_root_linear(x_pad, weight, bias):
    """y_pad = x_pad @ W^T + b, lane-dense padded f32 output [n_pad, out_pad]."""
    n_pad, in_pad = x_pad.shape
    out_c = weight.shape[0]
    out_pad = _round_up(out_c, LANE)
    wt = _pad_weight_t(weight, in_pad, out_pad)
    b = jnp.zeros((1, out_pad), jnp.float32).at[0, :out_c].set(
        bias.astype(jnp.float32)
    )
    tm = _tile_of(n_pad)
    return pl.pallas_call(
        _root_linear_kernel,
        out_shape=jax.ShapeDtypeStruct((n_pad, out_pad), jnp.float32),
        grid=(n_pad // tm,),
        in_specs=[
            pl.BlockSpec((tm, in_pad), lambda i: (i, 0)),
            pl.BlockSpec((in_pad, out_pad), lambda i: (0, 0)),
            pl.BlockSpec((1, out_pad), lambda i: (0, 0)),
        ],
        out_specs=pl.BlockSpec((tm, out_pad), lambda i: (i, 0)),
        compiler_params=pltpu.CompilerParams(dimension_semantics=("parallel",)),
    )(x_pad, wt, b)


def pallas_rel_agg_linear(adj_pad, rdeg_pad, x_src_pad, weight, acc):
    """acc += ((adj_pad @ x_src_pad) * rdeg) @ W^T — fused mean-aggregation +
    relation Linear, accumulated in-kernel into `acc` (input/output aliased)."""
    nd_pad, ns_pad = adj_pad.shape
    in_pad = x_src_pad.shape[1]
    out_pad = acc.shape[1]
    wt = _pad_weight_t(weight, in_pad, out_pad)
    tm = _tile_of(nd_pad)
    tk = _tile_of(ns_pad)
    return pl.pallas_call(
        _rel_agg_linear_kernel,
        out_shape=jax.ShapeDtypeStruct((nd_pad, out_pad), jnp.float32),
        grid_spec=pltpu.PrefetchScalarGridSpec(
            num_scalar_prefetch=0,
            grid=(nd_pad // tm, ns_pad // tk),
            in_specs=[
                pl.BlockSpec((tm, tk), lambda i, k: (i, k)),            # adj tile
                pl.BlockSpec((tk, in_pad), lambda i, k: (k, 0)),        # src feats
                pl.BlockSpec((tm, 1), lambda i, k: (i, 0)),             # 1/deg
                pl.BlockSpec((in_pad, out_pad), lambda i, k: (0, 0)),   # W^T
                pl.BlockSpec((tm, out_pad), lambda i, k: (i, 0)),       # acc in
            ],
            out_specs=pl.BlockSpec((tm, out_pad), lambda i, k: (i, 0)),
            scratch_shapes=[pltpu.VMEM((tm, in_pad), jnp.float32)],
        ),
        input_output_aliases={4: 0},  # update the destination buffer in place
        compiler_params=pltpu.CompilerParams(
            dimension_semantics=("parallel", "arbitrary")
        ),
    )(adj_pad, x_src_pad, rdeg_pad, wt, acc)


# ----------------------------------------------------------------------------
# RGCN model (parameter construction + forward glue)
# ----------------------------------------------------------------------------
def init_rgcn_params(
    key,
    in_channels,
    hidden_channels,
    out_channels,
    num_layers,
    num_nodes_dict,
    x_types,
    edge_types,
):
    node_types = list(num_nodes_dict.keys())
    emb_types = sorted(set(node_types) - set(x_types))
    params = {"embs": {}, "convs": []}

    def normal(key, shape, scale):
        return scale * jax.random.normal(key, shape, dtype=jnp.float32)

    keys = jax.random.split(key, 1 + num_layers)
    # embeddings for featureless node types
    emb_keys = jax.random.split(keys[0], max(len(emb_types), 1))
    for i, nt in enumerate(emb_types):
        fan = num_nodes_dict[nt] + in_channels
        params["embs"][nt] = normal(
            emb_keys[i], (num_nodes_dict[nt], in_channels), (2.0 / fan) ** 0.5
        )

    dims = [in_channels] + [hidden_channels] * (num_layers - 1) + [out_channels]
    for layer in range(num_layers):
        in_c, out_c = dims[layer], dims[layer + 1]
        lk = jax.random.split(keys[1 + layer], 2 * (len(edge_types) + len(node_types)))
        conv = {"root": {}, "rel": {}}
        idx = 0
        for nt in node_types:
            conv["root"][nt] = {
                "w": normal(lk[idx], (out_c, in_c), (1.0 / in_c) ** 0.5),
                "b": normal(lk[idx + 1], (out_c,), (1.0 / in_c) ** 0.5),
            }
            idx += 2
        for et in edge_types:
            key_str = f"{et[0]}_{et[1]}_{et[2]}"
            conv["rel"][key_str] = {
                "w": normal(lk[idx], (out_c, in_c), (1.0 / in_c) ** 0.5)
            }
            idx += 2
        params["convs"].append(conv)
    return params


def rgcn_conv_forward(conv_params, xpad_dict, graph):
    out_dict = {}
    # root transforms (Linear with bias), lane-dense padded outputs
    for nt, x_pad in xpad_dict.items():
        p = conv_params["root"][nt]
        out_dict[nt] = pallas_root_linear(x_pad, p["w"], p["b"])
    # relation transforms: fused mean-agg + Linear, accumulated in-kernel
    # TODO(synk): relations sharing identical padded (dst, src) shapes could be
    #             stacked into one batched pallas_call to amortize launch overhead.
    for (src, rel, dst), (adj_p, rdeg_p) in graph.items():
        w = conv_params["rel"][f"{src}_{rel}_{dst}"]["w"]
        out_dict[dst] = pallas_rel_agg_linear(
            adj_p, rdeg_p, xpad_dict[src], w, out_dict[dst]
        )
    return out_dict


def rgcn_forward(params, x_dict, adj_t_dict, training=False):
    # features (+ learned embeddings for featureless types)
    feats = dict(x_dict)
    for nt, emb in params["embs"].items():
        feats[nt] = emb
    n_true = {nt: x.shape[0] for nt, x in feats.items()}
    n_pad = {nt: _pad_count(n) for nt, n in n_true.items()}

    def pad_feats(x, rows):
        r, c = x.shape
        xp = jnp.zeros((rows, _round_up(c, LANE)), jnp.bfloat16)
        return xp.at[:r, :c].set(x.astype(jnp.bfloat16))

    xpad = {nt: pad_feats(x, n_pad[nt]) for nt, x in feats.items()}

    # adjacency prepared once (padded bf16 matrix + f32 reciprocal degrees), reused by every layer
    graph = {}
    for (src, rel, dst), adj in adj_t_dict.items():
        nd, ns = adj.shape
        adj_p = jnp.zeros((n_pad[dst], n_pad[src]), jnp.bfloat16)
        adj_p = adj_p.at[:nd, :ns].set(adj.astype(jnp.bfloat16))
        deg = jnp.sum(adj.astype(jnp.float32), axis=1)
        rdeg = 1.0 / jnp.maximum(deg, 1.0)
        rdeg_p = jnp.zeros((n_pad[dst], 1), jnp.float32).at[:nd, 0].set(rdeg)
        graph[(src, rel, dst)] = (adj_p, rdeg_p)

    # layers
    out_pad_dict = xpad
    n_layers = len(params["convs"])
    for li, conv_params in enumerate(params["convs"]):
        out_pad_dict = rgcn_conv_forward(conv_params, xpad, graph)
        if li < n_layers - 1:
            # NOTE: the reference script computes relu(x) and then immediately
            # overwrites it with dropout of the PRE-relu tensor, so in eval mode
            # (training=False) the net inter-layer activation is the identity.
            # TODO(synk): training-mode dropout (torch RNG) not reproduced.
            xpad = {nt: o.astype(jnp.bfloat16) for nt, o in out_pad_dict.items()}

    # slice padded outputs back to true shapes
    out_c = next(iter(params["convs"][-1]["root"].values()))["w"].shape[0]
    return {nt: out_pad_dict[nt][: n_true[nt], :out_c] for nt in feats}


# ----------------------------------------------------------------------------
# Pure-JAX f32 reference (same semantics) for a numerical sanity check
# ----------------------------------------------------------------------------
def rgcn_reference(params, x_dict, adj_t_dict):
    feats = dict(x_dict)
    for nt, emb in params["embs"].items():
        feats[nt] = emb
    h = feats
    for conv in params["convs"]:
        out = {}
        for nt, x in h.items():
            p = conv["root"][nt]
            out[nt] = x @ p["w"].T + p["b"]
        for (src, rel, dst), adj in adj_t_dict.items():
            deg = jnp.maximum(jnp.sum(adj, axis=1, keepdims=True), 1.0)
            agg = (adj @ h[src]) / deg
            out[dst] = out[dst] + agg @ conv["rel"][f"{src}_{rel}_{dst}"]["w"].T
        h = out  # eval-mode inter-layer activation is identity (see note above)
    return h


# ----------------------------------------------------------------------------
# Example
# ----------------------------------------------------------------------------
if __name__ == "__main__":
    key = jax.random.PRNGKey(0)
    in_channels = 32
    hidden_channels = 32
    out_channels = 8
    num_layers = 2

    # small MAG-like heterogeneous graph
    num_nodes_dict = {"paper": 32, "author": 24, "institution": 16}
    x_types = ["paper"]  # only 'paper' has input features; others use embeddings
    edge_types = [
        ("author", "writes", "paper"),
        ("paper", "cites", "paper"),
        ("author", "affiliated_with", "institution"),
    ]

    k_feat, k_adj, k_param = jax.random.split(key, 3)

    x_dict = {
        "paper": jax.random.normal(
            k_feat, (num_nodes_dict["paper"], in_channels), dtype=jnp.float32
        )
    }

    adj_keys = jax.random.split(k_adj, len(edge_types))
    adj_t_dict = {}
    for ak, (src, rel, dst) in zip(adj_keys, edge_types):
        shape = (num_nodes_dict[dst], num_nodes_dict[src])  # adj_t: [dst, src]
        adj_t_dict[(src, rel, dst)] = (
            jax.random.uniform(ak, shape) < 0.2
        ).astype(jnp.float32)

    params = init_rgcn_params(
        k_param,
        in_channels,
        hidden_channels,
        out_channels,
        num_layers,
        num_nodes_dict,
        x_types,
        edge_types,
    )

    out_dict = rgcn_forward(params, x_dict, adj_t_dict, training=False)
    for v in out_dict.values():
        jax.block_until_ready(v)

    # shape sanity
    assert out_dict["paper"].shape == (num_nodes_dict["paper"], out_channels)
    assert out_dict["author"].shape == (num_nodes_dict["author"], out_channels)
    assert out_dict["institution"].shape == (
        num_nodes_dict["institution"],
        out_channels,
    )

    # numerical sanity against pure-JAX f32 reference (loose tol: bf16 matmul inputs)
    ref = rgcn_reference(params, x_dict, adj_t_dict)
    for nt in out_dict:
        err = float(jnp.max(jnp.abs(out_dict[nt] - ref[nt])))
        assert err < 2e-1, f"{nt}: max abs error {err}"

    print("KERNEL_OK")
</pallas_src>

<mosaic_0001>
module attributes {stable_mosaic.version = 11 : i64} {
  func.func @_root_linear_kernel(%arg0: i32, %arg1: memref<32x128xbf16, #tpu.memory_space<vmem>>, %arg2: memref<128x128xbf16, #tpu.memory_space<vmem>>, %arg3: memref<1x128xf32, #tpu.memory_space<vmem>>, %arg4: memref<32x128xf32, #tpu.memory_space<vmem>>) attributes {dimension_semantics = [#tpu.dimension_semantics<parallel>], iteration_bounds = array<i64: 1>, scalar_prefetch = 0 : i64, scratch_operands = 0 : i64, tpu.core_type = #tpu.core_type<tc>, window_params = [{transform_indices = @transform_0, window_bounds = array<i64: 32, 128>}, {pipeline_mode = #tpu.pipeline_mode<synchronous>, transform_indices = @transform_1, window_bounds = array<i64: 128, 128>}, {pipeline_mode = #tpu.pipeline_mode<synchronous>, transform_indices = @transform_2, window_bounds = array<i64: 1, 128>}, {transform_indices = @transform_3, window_bounds = array<i64: 32, 128>}]} {
    %c0 = arith.constant 0 : index
    %c0_0 = arith.constant 0 : index
    %0 = vector.load %arg1[%c0, %c0_0] : memref<32x128xbf16, #tpu.memory_space<vmem>>, vector<32x128xbf16>
    %c0_1 = arith.constant 0 : index
    %c0_2 = arith.constant 0 : index
    %1 = vector.load %arg2[%c0_1, %c0_2] : memref<128x128xbf16, #tpu.memory_space<vmem>>, vector<128x128xbf16>
    %cst = arith.constant dense<0.000000e+00> : vector<32x128xf32>
    %2 = tpu.matmul %0, %1, %cst {dimension_numbers = #tpu.dot_dimension_numbers<[1], [0], [0], [1], [0, 0, 1, 1], [], []>} : vector<32x128xbf16>, vector<128x128xbf16>, vector<32x128xf32> -> vector<32x128xf32>
    %c0_3 = arith.constant 0 : index
    %c0_4 = arith.constant 0 : index
    %3 = vector.load %arg3[%c0_3, %c0_4] : memref<1x128xf32, #tpu.memory_space<vmem>>, vector<1x128xf32>
    %4 = vector.broadcast %3 : vector<1x128xf32> to vector<32x128xf32>
    %5 = arith.addf %2, %4 : vector<32x128xf32>
    %c0_5 = arith.constant 0 : index
    %c0_6 = arith.constant 0 : index
    %6 = vector.load %arg4[%c0_5, %c0_6] : memref<32x128xf32, #tpu.memory_space<vmem>>, vector<32x128xf32>
    tpu.vector_store %arg4[%c0_5, %c0_6], %5 {strides = array<i32>} : memref<32x128xf32, #tpu.memory_space<vmem>>, vector<32x128xf32>,
    return
  }
  func.func @transform_0(%arg0: i32) -> (i32, i32) {
    %c0_i32 = arith.constant 0 : i32
    %c0_i32_0 = arith.constant 0 : i32
    return %arg0, %c0_i32 : i32, i32
  }
  func.func @transform_1(%arg0: i32) -> (i32, i32) {
    %c0_i32 = arith.constant 0 : i32
    %c0_i32_0 = arith.constant 0 : i32
    %c0_i32_1 = arith.constant 0 : i32
    return %c0_i32, %c0_i32_0 : i32, i32
  }
  func.func @transform_2(%arg0: i32) -> (i32, i32) {
    %c0_i32 = arith.constant 0 : i32
    %c0_i32_0 = arith.constant 0 : i32
    %c0_i32_1 = arith.constant 0 : i32
    return %c0_i32, %c0_i32_0 : i32, i32
  }
  func.func @transform_3(%arg0: i32) -> (i32, i32) {
    %c0_i32 = arith.constant 0 : i32
    %c0_i32_0 = arith.constant 0 : i32
    return %arg0, %c0_i32 : i32, i32
  }
}

</mosaic_0001>

<bundles_post_ra>
// kernel: tpu_custom_call.1
= control target key start
LH: loop header
LB: loop body
LE: loop exit
PB: predicated region body
PF: predicated region fallthrough
CT: control target
= control target key end

     0   :  { %8 = vsyncpa [#allocation3], 0  ;;  %s365_s0 = inlined_call_operand.hbm [shape: bf16[32,128], index: 0, kind: input, shape index: {}]   ;;  %s366_s1 = inlined_call_operand.hbm [shape: bf16[128,128], index: 1, kind: input, shape index: {}]   ;;  %s367_s2 = inlined_call_operand.vmem [shape: f32[1,128], index: 2, kind: input, shape index: {}]   ;;  %s368_s3 = inlined_call_operand.hbm [shape: f32[32,128], index: 3, kind: output, shape index: {}]  }
   0x1   :  { %9 = vsyncpa [#allocation6], 0 }
   0x2   :  { %10 = vsyncpa [#allocation4], 0  ;;  %s326_s12 = smov [#allocation2]  }
   0x3   :  { %s16_s13 = sshll.u32 %s326_s12, 4  ;;  %s17_s13 = int_to_ptr.vmem [resolvable:$true] %s16_s13 }
   0x4   :  { %s268_s14 = scalar_lea.vmem %s17_s13, 256  ;;  %p273_p1 = scmp.lt.s32.totalorder %s17_s13, %s17_s13 }
   0x5   :  { %p269_p0 = scmp.ne.s32.totalorder %s17_s13, %s268_s14  ;;  %p274_p2 = scmp.lt.s32.totalorder %s268_s14, %s268_s14 }
   0x7   :  { %p275_p3 = por %p274_p2, %p273_p1 }
   0x9   :  { %p276_p4 = pnand %p275_p3, %p269_p0 }
   0xb   :  { %279 = shalt.err (!%p276_p4)
}
   0xc   :  { %s327_s15 = smov 64   ;;  %s328_s16 = smov 4  }
   0xd   :  { %22 = dma.hbm_to_vmem [thread:$0]  %s365_s0, 256, %s17_s13, [#allocation3], %s327_s15, %s327_s15, %s328_s16  }
   0xe   :  { %s329_s19 = smov [#allocation5]  }
   0xf   :  { %s28_s20 = sshll.u32 %s329_s19, 4  ;;  %s29_s20 = int_to_ptr.vmem [resolvable:$true] %s28_s20 }
  0x10   :  { %s288_s21 = scalar_lea.vmem %s29_s20, 1024  ;;  %p293_p6 = scmp.lt.s32.totalorder %s29_s20, %s29_s20 }
  0x11   :  { %p289_p5 = scmp.ne.s32.totalorder %s29_s20, %s288_s21  ;;  %p294_p7 = scmp.lt.s32.totalorder %s288_s21, %s288_s21 }
  0x13   :  { %p295_p8 = por %p294_p7, %p293_p6 }
  0x15   :  { %p296_p9 = pnand %p295_p8, %p289_p5 }
  0x17   :  { %299 = shalt.err (!%p296_p9)
}
  0x18   :  { %34 = dma.hbm_to_vmem [thread:$0]  %s366_s1, 1024, %s29_s20, [#allocation6], %s327_s15, %s327_s15, %s328_s16  }
  0x19   :  { %320 = dma.done.wait [#allocation3], 256  }
  0x1a   :  { %321 = vsyncadd [#allocation3], 4294967040 }
  0x1b   :  { %322 = dma.done.wait [#allocation6], 1024  }
  0x1c   :  { %323 = vsyncadd [#allocation6], 4294966272  ;;  %v250_v0 = vld [vmem:[#allocation5 + $0x38] sm:$0xff]   ;;  %v251_v1 = vld [vmem:[#allocation5 + $0x30] sm:$0xff]   ;;  %s330_s24 = smov [#allocation7]  }
  0x1d   :  { %223 = vmatprep.subr.bf16.mxu0 %v250_v0  ;;  %v252_v2 = vld [vmem:[#allocation5 + $0x28] sm:$0xff]   ;;  %v253_v3 = vld [vmem:[#allocation5 + $0x20] sm:$0xff]   ;;  %v258_v4 = vld [vmem:[#allocation2] sm:$0xff]   ;;  %s189_s25 = sshll.u32 %s330_s24, 4  ;;  %s190_s25 = int_to_ptr.vmem [resolvable:$true] %s189_s25 }
  0x1e   :  { %224 = vmatpush3.bf16.msra.mxu0 %v250_v0  ;;  %239 = vmatprep.mubr.bf16.mxu0 %v258_v4  ;;  %v254_v5 = vld [vmem:[#allocation5 + $0x18] sm:$0xff]   ;;  %v255_v6 = vld [vmem:[#allocation5 + $0x10] sm:$0xff]   ;;  %v256_v7 = vld [vmem:[#allocation5 + $0x8] sm:$0xff]   ;;  %s300_s26 = scalar_lea.vmem %s190_s25, 512  ;;  %p305_p11 = scmp.lt.s32.totalorder %s190_s25, %s190_s25 }
  0x1f   :  { %225 = vmatprep.subr.bf16.mxu0 %v251_v1  ;;  %v257_v8 = vld [vmem:[#allocation5] sm:$0xff]   ;;  %v259_v9 = vld [vmem:[#allocation2 + $0x8] sm:$0xff]   ;;  %v202_v10 = vld [vmem:[%s367_s2] ss:$0 sm:$0xff]  ;;  %p301_p10 = scmp.ne.s32.totalorder %s190_s25, %s300_s26  ;;  %p306_p12 = scmp.lt.s32.totalorder %s300_s26, %s300_s26 }
  0x21   :  { %p307_p13 = por %p306_p12, %p305_p11 }
  0x22   :  { %226 = vmatpush3.bf16.msra.mxu0 %v251_v1 }
  0x23   :  { %227 = vmatprep.subr.bf16.mxu0 %v252_v2  ;;  %p308_p0 = pnand %p307_p13, %p301_p10 }
  0x26   :  { %228 = vmatpush3.bf16.msra.mxu0 %v252_v2 }
  0x27   :  { %229 = vmatprep.subr.bf16.mxu0 %v253_v3 }
  0x2a   :  { %230 = vmatpush3.bf16.msra.mxu0 %v253_v3 }
  0x2b   :  { %231 = vmatprep.subr.bf16.mxu0 %v254_v5 }
  0x2e   :  { %232 = vmatpush3.bf16.msra.mxu0 %v254_v5 }
  0x2f   :  { %233 = vmatprep.subr.bf16.mxu0 %v255_v6 }
  0x32   :  { %234 = vmatpush3.bf16.msra.mxu0 %v255_v6 }
  0x33   :  { %235 = vmatprep.subr.bf16.mxu0 %v256_v7 }
  0x36   :  { %236 = vmatpush3.bf16.msra.mxu0 %v256_v7 }
  0x37   :  { %237 = vmatprep.subr.bf16.mxu0 %v257_v8 }
  0x3a   :  { %238 = vmatpush3.bf16.msra.mxu0 %v257_v8 }
  0x3d   :  { %240 = vmatmul.mubr.bf16.vlgmr.msra.gmra.mxu0 %v259_v9 }
  0xfd   :  { %v241_v11 = vpop.f32.mrf.mxu0 }
  0xfe   :  { %v174_v12 = vadd.f32 %v241_v11, %v202_v10 }
  0xff   :  { %v165_v13 = vpop.f32.mrf.mxu0 }
 0x100   :  { %182 = vst [vmem:[#allocation7 + $0x10] sm:$0xff] %v174_v12  ;;  %v166_v14 = vadd.f32 %v202_v10, %v165_v13 }
 0x101   :  { %v242_v15 = vpop.f32.mrf.mxu0 }
 0x102   :  { %180 = vst [vmem:[#allocation7] sm:$0xff] %v166_v14  ;;  %v177_v16 = vadd.f32 %v242_v15, %v202_v10 }
 0x103   :  { %v168_v17 = vpop.f32.mrf.mxu0 }
 0x104   :  { %183 = vst [vmem:[#allocation7 + $0x18] sm:$0xff] %v177_v16  ;;  %v169_v18 = vadd.f32 %v202_v10, %v168_v17 }
 0x106   :  { %181 = vst [vmem:[#allocation7 + $0x8] sm:$0xff] %v169_v18 }
 0x107   :  { %311 = shalt.err (!%p308_p0)
}
 0x108   :  { %s331_s2 = smov 128   ;;  %s332_s27 = smov 8  }
 0x109   :  { %195 = dma.vmem_to_hbm [thread:$0]  %s190_s25, 512, %s368_s3, [#allocation4], %s331_s2, %s331_s2, %s332_s27  }
 0x10a   :  { %324 = dma.done.wait [#allocation4], 512  }
 0x10b   :  { %325 = vsyncadd [#allocation4], 4294966784 }
 0x10c   :  { %199 = vsyncpa [#allocation3], 1 }
 0x10d   :  { %200 = vsyncpa [#allocation6], 1 }
 0x10e   :  { %201 = vsyncpa [#allocation4], 1 }

</bundles_post_ra>
